<compile_context>
chip_gen: v5e
topology: v5e:2x2
jax: 0.10.0
libtpu: 0.0.40
codegen_flags: <defaults>
</compile_context>

<pallas_src>
import jax
import jax.numpy as jnp
from jax import lax
from jax.experimental import pallas as pl
from jax.experimental.pallas import tpu as pltpu

EMB_DIM = 32
NUM_USERS = 64
NUM_MOVIES = 96
BATCH = 512
CHUNK_B = 128        # batch lanes gathered per MXU push (keeps one-hot ~40 vregs)
EPS = 1e-8           # torch.nn.functional.cosine_similarity default eps


def mf_kernel(u_ref, m_ref, tab_ref, out_ref):
    # u_ref   : (1, TILE_B) int32  -- user indices (lane-dense)
    # m_ref   : (1, TILE_B) int32  -- movie indices, already offset by NUM_USERS
    # tab_ref : (EMB_DIM+1, N_TOTAL) f32 -- concat(user, movie)^T with squared-norm row
    # out_ref : (1, TILE_B) f32    -- lane-dense similarity row
    emb_dim = tab_ref.shape[0] - 1
    n_total = tab_ref.shape[1]
    tile_b = out_ref.shape[1]
    n_chunks = tile_b // CHUNK_B

    # Loop-invariant iota for the one-hot compare (hoisted out of the loop).
    iota = lax.broadcasted_iota(jnp.int32, (n_total, 2 * CHUNK_B), 0)

    @pl.loop(0, n_chunks)
    def _(c):
        start = pl.multiple_of(c * CHUNK_B, CHUNK_B)
        sl = pl.ds(start, CHUNK_B)

        # (1, 2*CHUNK_B): [user chunk | movie chunk] (movie already offset).
        idx = jnp.concatenate([u_ref[:, sl], m_ref[:, sl]], axis=1)
        onehot = (iota == idx).astype(jnp.float32)            # (N_TOTAL, 2*CHUNK_B)

        # Single fused MXU gather of embeddings AND their squared norms
        # (the extra table row): (EMB_DIM+1, N_TOTAL) @ (N_TOTAL, 2*CHUNK_B).
        emb = jnp.dot(tab_ref[...], onehot,
                      preferred_element_type=jnp.float32)     # (EMB_DIM+1, 2*CHUNK_B)

        u_emb = emb[:, :CHUNK_B]                              # (EMB_DIM+1, CHUNK_B)
        m_emb = emb[:, CHUNK_B:]

        # Only the u·m reduction remains; norms come straight from row EMB_DIM.
        dot = jnp.sum(u_emb[:emb_dim] * m_emb[:emb_dim], axis=0, keepdims=True)
        u_sq = u_emb[emb_dim:, :]                             # (1, CHUNK_B)
        m_sq = m_emb[emb_dim:, :]

        # max(||u||*||m||, eps) == sqrt(max(|u|^2*|m|^2, eps^2)); one EUP rsqrt.
        inv = lax.rsqrt(jnp.maximum(u_sq * m_sq, EPS * EPS))
        out_ref[:, sl] = dot * inv * 2.5 + 2.75


def _default_num_tiles():
    """2 parallel batch tiles on dual-TensorCore chips (v7x), else 1."""
    try:
        kind = jax.devices()[0].device_kind.lower()
    except Exception:
        return 1
    if "v7" in kind or "7x" in kind:
        return 2
    return 1


def make_factorization_forward(user_table, movie_table, *, num_tiles=None):
    """Build a forward fn; table prep happens once here (not per call)."""
    num_users, emb_dim = user_table.shape
    n_total = num_users + movie_table.shape[0]
    if num_tiles is None:
        num_tiles = _default_num_tiles()

    # Hoisted per-model prep: fused + transposed table (EMB_DIM, N_TOTAL) with
    # a per-column squared-norm row appended -> (EMB_DIM+1, N_TOTAL).
    tab_t = jnp.concatenate([user_table, movie_table], axis=0).T
    norm_row = jnp.sum(tab_t * tab_t, axis=0, keepdims=True)
    tab_aug = jnp.concatenate([tab_t, norm_row], axis=0).astype(jnp.float32)

    def forward(user_idx, movie_idx):
        # NOTE: indices are trusted (no bounds check); out-of-range rows match
        # no one-hot column and would yield sim == 2.75 silently.
        b = user_idx.shape[0]
        lane_tile = num_tiles * CHUNK_B
        b_pad = pl.cdiv(b, lane_tile) * lane_tile
        tile_b = b_pad // num_tiles

        # Two separate lane-dense index rows; tail padded with index 0 (valid
        # row; padded lanes are sliced off below).
        u = jnp.pad(user_idx.astype(jnp.int32), (0, b_pad - b)).reshape(1, b_pad)
        m = (jnp.pad(movie_idx.astype(jnp.int32), (0, b_pad - b))
             + num_users).reshape(1, b_pad)

        out = pl.pallas_call(
            mf_kernel,
            out_shape=jax.ShapeDtypeStruct((1, b_pad), jnp.float32),
            grid_spec=pltpu.PrefetchScalarGridSpec(
                num_scalar_prefetch=0,
                grid=(num_tiles,),
                in_specs=[
                    pl.BlockSpec((1, tile_b), lambda i: (0, i)),          # user idx
                    pl.BlockSpec((1, tile_b), lambda i: (0, i)),          # movie idx
                    pl.BlockSpec((emb_dim + 1, n_total), lambda i: (0, 0)),  # table^T+norms
                ],
                out_specs=pl.BlockSpec((1, tile_b), lambda i: (0, i)),    # lane-dense out
            ),
            compiler_params=pltpu.CompilerParams(
                dimension_semantics=("parallel",)),
        )(u, m, tab_aug)
        return out[0, :b]

    return jax.jit(forward)


def reference_forward(user_idx, movie_idx, user_table, movie_table):
    user = user_table[user_idx]
    movie = movie_table[movie_idx]
    dot = jnp.sum(user * movie, axis=-1)
    denom = jnp.maximum(
        jnp.linalg.norm(user, axis=-1) * jnp.linalg.norm(movie, axis=-1), EPS)
    return dot / denom * 2.5 + 2.75


if __name__ == "__main__":
    key = jax.random.PRNGKey(0)
    k_u, k_m, k_ui, k_mi = jax.random.split(key, 4)

    # nn.Embedding default init: N(0, 1)
    user_table = jax.random.normal(k_u, (NUM_USERS, EMB_DIM), dtype=jnp.float32)
    movie_table = jax.random.normal(k_m, (NUM_MOVIES, EMB_DIM), dtype=jnp.float32)

    user_idx = jax.random.randint(k_ui, (BATCH,), 0, NUM_USERS, dtype=jnp.int32)
    movie_idx = jax.random.randint(k_mi, (BATCH,), 0, NUM_MOVIES, dtype=jnp.int32)

    forward = make_factorization_forward(user_table, movie_table)
    out = jax.block_until_ready(forward(user_idx, movie_idx))

    ref = reference_forward(user_idx, movie_idx, user_table, movie_table)
    assert out.shape == (BATCH,)
    assert jnp.allclose(out, ref, atol=1e-5, rtol=1e-5), (out, ref)

    print("KERNEL_OK")
</pallas_src>

<mosaic_0001>
module attributes {stable_mosaic.version = 11 : i64} {
  func.func @mf_kernel(%arg0: i32, %arg1: memref<1x512xi32, #tpu.memory_space<vmem>>, %arg2: memref<1x512xi32, #tpu.memory_space<vmem>>, %arg3: memref<33x160xf32, #tpu.memory_space<vmem>>, %arg4: memref<1x512xf32, #tpu.memory_space<vmem>>) attributes {dimension_semantics = [#tpu.dimension_semantics<parallel>], iteration_bounds = array<i64: 1>, scalar_prefetch = 0 : i64, scratch_operands = 0 : i64, tpu.core_type = #tpu.core_type<tc>, window_params = [{transform_indices = @transform_0, window_bounds = array<i64: 1, 512>}, {transform_indices = @transform_1, window_bounds = array<i64: 1, 512>}, {pipeline_mode = #tpu.pipeline_mode<synchronous>, transform_indices = @transform_2, window_bounds = array<i64: 33, 160>}, {transform_indices = @transform_3, window_bounds = array<i64: 1, 512>}]} {
    %0 = tpu.iota {dimensions = array<i32: 0>} : vector<160x256xi32>
    %c0_i32 = arith.constant 0 : i32
    %c4_i32 = arith.constant 4 : i32
    %1 = arith.addi %c0_i32, %c4_i32 : i32
    %c1_i32 = arith.constant 1 : i32
    scf.for %arg5 = %c0_i32 to %1 step %c1_i32  : i32 {
      %c1_i32_1 = arith.constant 1 : i32
      %2 = arith.muli %arg5, %c1_i32_1 : i32
      %c0_i32_2 = arith.constant 0 : i32
      %3 = arith.addi %c0_i32_2, %2 : i32
      %c128_i32 = arith.constant 128 : i32
      %4 = arith.muli %3, %c128_i32 : i32
      %5 = tpu.assume_multiple %4, 128 : i32
      %c0 = arith.constant 0 : index
      %6 = arith.index_cast %5 : i32 to index
      %7 = vector.load %arg1[%c0, %6] : memref<1x512xi32, #tpu.memory_space<vmem>>, vector<1x128xi32>
      %c0_3 = arith.constant 0 : index
      %8 = arith.index_cast %5 : i32 to index
      %9 = vector.load %arg2[%c0_3, %8] : memref<1x512xi32, #tpu.memory_space<vmem>>, vector<1x128xi32>
      %10 = tpu.concatenate %7, %9 in 1 : vector<1x128xi32>, vector<1x128xi32> -> vector<1x256xi32>
      %11 = vector.broadcast %10 : vector<1x256xi32> to vector<160x256xi32>
      %12 = arith.cmpi eq, %0, %11 : vector<160x256xi32>
      %13 = arith.extui %12 : vector<160x256xi1> to vector<160x256xi32>
      %14 = arith.sitofp %13 : vector<160x256xi32> to vector<160x256xf32>
      %c0_4 = arith.constant 0 : index
      %c0_5 = arith.constant 0 : index
      %15 = vector.load %arg3[%c0_4, %c0_5] : memref<33x160xf32, #tpu.memory_space<vmem>>, vector<33x160xf32>
      %cst = arith.constant dense<0.000000e+00> : vector<33x256xf32>
      %16 = tpu.matmul %15, %14, %cst {dimension_numbers = #tpu.dot_dimension_numbers<[1], [0], [0], [1], [0, 0, 1, 1], [], []>} : vector<33x160xf32>, vector<160x256xf32>, vector<33x256xf32> -> vector<33x256xf32>
      %17 = vector.extract_strided_slice %16 {offsets = [0, 0], sizes = [33, 128], strides = [1, 1]} : vector<33x256xf32> to vector<33x128xf32>
      %18 = vector.extract_strided_slice %16 {offsets = [0, 128], sizes = [33, 128], strides = [1, 1]} : vector<33x256xf32> to vector<33x128xf32>
      %19 = vector.extract_strided_slice %17 {offsets = [0, 0], sizes = [32, 128], strides = [1, 1]} : vector<33x128xf32> to vector<32x128xf32>
      %20 = vector.extract_strided_slice %18 {offsets = [0, 0], sizes = [32, 128], strides = [1, 1]} : vector<33x128xf32> to vector<32x128xf32>
      %21 = arith.mulf %19, %20 : vector<32x128xf32>
      %cst_6 = arith.constant dense<0.000000e+00> : vector<128xf32>
      %22 = vector.multi_reduction <add>, %21, %cst_6 [0] : vector<32x128xf32> to vector<128xf32>
      %23 = vector.shape_cast %22 : vector<128xf32> to vector<1x128xf32>
      %24 = vector.extract_strided_slice %17 {offsets = [32, 0], sizes = [1, 128], strides = [1, 1]} : vector<33x128xf32> to vector<1x128xf32>
      %25 = vector.extract_strided_slice %18 {offsets = [32, 0], sizes = [1, 128], strides = [1, 1]} : vector<33x128xf32> to vector<1x128xf32>
      %26 = arith.mulf %24, %25 : vector<1x128xf32>
      %cst_7 = arith.constant 1.000000e-16 : f32
      %27 = vector.broadcast %cst_7 : f32 to vector<1x128xf32>
      %28 = arith.maximumf %26, %27 : vector<1x128xf32>
      %29 = math.rsqrt %28 : vector<1x128xf32>
      %30 = arith.mulf %23, %29 : vector<1x128xf32>
      %cst_8 = arith.constant 2.500000e+00 : f32
      %31 = vector.broadcast %cst_8 : f32 to vector<1x128xf32>
      %32 = arith.mulf %30, %31 : vector<1x128xf32>
      %cst_9 = arith.constant 2.750000e+00 : f32
      %33 = vector.broadcast %cst_9 : f32 to vector<1x128xf32>
      %34 = arith.addf %32, %33 : vector<1x128xf32>
      %c0_10 = arith.constant 0 : index
      %35 = arith.index_cast %5 : i32 to index
      %36 = vector.load %arg4[%c0_10, %35] : memref<1x512xf32, #tpu.memory_space<vmem>>, vector<1x128xf32>
      tpu.vector_store %arg4[%c0_10, %35], %34 {strides = array<i32>} : memref<1x512xf32, #tpu.memory_space<vmem>>, vector<1x128xf32>,
    }
    %c4_i32_0 = arith.constant 4 : i32
    return
  }
  func.func @transform_0(%arg0: i32) -> (i32, i32) {
    %c0_i32 = arith.constant 0 : i32
    %c0_i32_0 = arith.constant 0 : i32
    return %c0_i32, %arg0 : i32, i32
  }
  func.func @transform_1(%arg0: i32) -> (i32, i32) {
    %c0_i32 = arith.constant 0 : i32
    %c0_i32_0 = arith.constant 0 : i32
    return %c0_i32, %arg0 : i32, i32
  }
  func.func @transform_2(%arg0: i32) -> (i32, i32) {
    %c0_i32 = arith.constant 0 : i32
    %c0_i32_0 = arith.constant 0 : i32
    %c0_i32_1 = arith.constant 0 : i32
    return %c0_i32, %c0_i32_0 : i32, i32
  }
  func.func @transform_3(%arg0: i32) -> (i32, i32) {
    %c0_i32 = arith.constant 0 : i32
    %c0_i32_0 = arith.constant 0 : i32
    return %c0_i32, %arg0 : i32, i32
  }
}

</mosaic_0001>

<bundles_post_ra>
// kernel: forward.1
= control target key start
LH: loop header
LB: loop body
LE: loop exit
PB: predicated region body
PF: predicated region fallthrough
CT: control target
= control target key end

     0   :  { %8 = vsyncpa [#allocation3], 0  ;;  %s814_s0 = inlined_call_operand.vmem [shape: s32[1,512], index: 0, kind: input, shape index: {}]   ;;  %s815_s1 = inlined_call_operand.vmem [shape: s32[1,512], index: 1, kind: input, shape index: {}]   ;;  %s816_s2 = inlined_call_operand.hbm [shape: f32[33,160], index: 2, kind: input, shape index: {}]   ;;  %s817_s3 = inlined_call_operand.hbm [shape: f32[1,512], index: 3, kind: output, shape index: {}]  }
   0x1   :  { %9 = vsyncpa [#allocation4], 0  ;;  %s18_s14 = sshll.u32 %s816_s2, 4  ;;  %s568_s15 = smov [#allocation2]   ;;  %s19_s14 = int_to_ptr.hbm [resolvable:$true] %s18_s14 }
   0x2   :  { %s20_s16 = sshll.u32 %s568_s15, 4  ;;  %s569_s17 = smov 256   ;;  %s21_s16 = int_to_ptr.vmem [resolvable:$true] %s20_s16 }
   0x3   :  { %s570_s18 = smov 16  }
   0x4   :  { %26 = dma.hbm_to_vmem [thread:$0]  %s19_s14, 1280, %s21_s16, [#allocation3], %s569_s17, %s569_s17, %s570_s18  }
   0x5   :  { %560 = dma.done.wait [#allocation3], 1280  }
   0x6   :  { %561 = vsyncadd [#allocation3], 4294966016  ;;  %v31_v0 = vlaneseq  ;;  %s656_s2 = smov 0  }
   0x8   :  { %v597_v1 = vshrl.u32 %v31_v0, 7 }
   0xa   :  { %v600_v2 = vadd.s32 8, %v597_v1  ;;  %v603_v3 = vadd.s32 16, %v597_v1  ;;  %v606_v4 = vadd.s32 24, %v597_v1  ;;  %v609_v5 = vadd.s32 32, %v597_v1 }
   0xb   :  { %v612_v6 = vadd.s32 40, %v597_v1  ;;  %v615_v7 = vadd.s32 48, %v597_v1  ;;  %v618_v8 = vadd.s32 56, %v597_v1  ;;  %v621_v9 = vadd.s32 64, %v597_v1 }
   0xc   :  { %v624_v10 = vadd.s32 72, %v597_v1  ;;  %v627_v11 = vadd.s32 80, %v597_v1  ;;  %v630_v12 = vadd.s32 88, %v597_v1  ;;  %v633_v13 = vadd.s32 96, %v597_v1 }
   0xd   :  { %v636_v14 = vadd.s32 104, %v597_v1  ;;  %v639_v15 = vadd.s32 112, %v597_v1  ;;  %v642_v16 = vadd.s32 120, %v597_v1  ;;  %v645_v17 = vadd.s32 128, %v597_v1 }
   0xe   :  { %v648_v18 = vadd.s32 136, %v597_v1  ;;  %v651_v19 = vadd.s32 144, %v597_v1  ;;  %v654_v20 = vadd.s32 152, %v597_v1 }
   0xf LB: > { %s400_s19 = sshll.u32 %s566_s2, 7  ;;  %v571_v23 = vmov 1.0   ;;  %v188_v24 = vld [vmem:[#allocation2 + $0x8] sm:$0xff]  ;;  %v190_v25 = vld [vmem:[#allocation2 + $0x18] sm:$0xff]  ;;  %v187_v27 = vld [vmem:[#allocation2] sm:$0xff]  ;;  %s57_s2 = sadd.s32 1, %s566_s2   ;;  %s566_s2 = sphi %s656_s2, %s57_s2  }
  0x10   : > { %s662_s20 = sshra.s32 %s400_s19, 7  ;;  %v192_v26 = vld [vmem:[#allocation2 + $0x28] sm:$0xff]  ;;  %v194_v28 = vld [vmem:[#allocation2 + $0x38] sm:$0xff]  ;;  %v189_v29 = vld [vmem:[#allocation2 + $0x10] sm:$0xff]  ;;  %p54_p0 = scmp.ge.s32.totalorder %s57_s2, 4  }
  0x11   : > { %s63_s23 = scalar_lea.vmem %s815_s1, %s662_s20  ;;  %s61_s26 = scalar_lea.vmem %s814_s0, %s662_s20  ;;  %v196_v30 = vld [vmem:[#allocation2 + $0x48] sm:$0x1]  ;;  %v191_v31 = vld [vmem:[#allocation2 + $0x20] sm:$0xff]  ;;  %v193_v32 = vld [vmem:[#allocation2 + $0x30] sm:$0xff] }
  0x12   : > { %v672_v21 = vld [vmem:[%s63_s23] ss:$0 sm:$0xff]  ;;  %s369_s27 = scalar_lea.vmem [#allocation5], %s662_s20  ;;  %s382_s30 = sshll.u32 (%p54_p0), %s817_s3, 4  ;;  %s383_s30 = int_to_ptr.hbm [resolvable:$true] %s382_s30 }
  0x13   : > { %v674_v22 = vld [vmem:[%s61_s26] ss:$0 sm:$0xff]  ;;  %vm98_vm0 = vcmp.eq.s32.totalorder %v642_v16, %v672_v21  ;;  %vm96_vm1 = vcmp.eq.s32.totalorder %v639_v15, %v672_v21  ;;  %vm94_vm4 = vcmp.eq.s32.totalorder %v636_v14, %v672_v21  ;;  %vm92_vm6 = vcmp.eq.s32.totalorder %v633_v13, %v672_v21  ;;  %s572_s4 = smov (%p54_p0), [#allocation5]  }
  0x14   : > { %466 = vmatpush.msk.msra.mxu2 %vm98_vm0, %v571_v23  ;;  %vm97_vm2 = vcmp.eq.s32.totalorder %v642_v16, %v674_v22  ;;  %vm95_vm3 = vcmp.eq.s32.totalorder %v639_v15, %v674_v22  ;;  %vm93_vm5 = vcmp.eq.s32.totalorder %v636_v14, %v674_v22  ;;  %vm91_vm7 = vcmp.eq.s32.totalorder %v633_v13, %v674_v22  ;;  %v195_v33 = vld [vmem:[#allocation2 + $0x40] sm:$0x1]  ;;  %s380_s5 = sshll.u32 (%p54_p0), %s572_s4, 4  ;;  %s381_s5 = int_to_ptr.vmem [resolvable:$true] %s380_s5 }
  0x15   : > { %441 = vmatpush.msk.msra.mxu0 %vm97_vm2, %v571_v23  ;;  %vm106_vm8 = vcmp.eq.s32.totalorder %v654_v20, %v672_v21  ;;  %vm90_vm9 = vcmp.eq.s32.totalorder %v630_v12, %v672_v21  ;;  %vm104_vm10 = vcmp.eq.s32.totalorder %v651_v19, %v672_v21  ;;  %vm89_vm11 = vcmp.eq.s32.totalorder %v630_v12, %v674_v22 }
  0x16   : > { %467 = vmatpush.msk.msra.mxu2 %vm96_vm1, %v571_v23  ;;  %482 = vmatpush.msk.msra.mxu3 %vm106_vm8, %v571_v23  ;;  %vm102_vm12 = vcmp.eq.s32.totalorder %v648_v18, %v672_v21  ;;  %vm88_vm13 = vcmp.eq.s32.totalorder %v627_v11, %v672_v21  ;;  %vm105_vm14 = vcmp.eq.s32.totalorder %v654_v20, %v674_v22 }
  0x17   : > { %442 = vmatpush.msk.msra.mxu0 %vm95_vm3, %v571_v23  ;;  %vm87_vm15 = vcmp.eq.s32.totalorder %v627_v11, %v674_v22  ;;  %457 = vmatpush.msk.msra.mxu1 %vm105_vm14, %v571_v23  ;;  %vm100_vm0 = vcmp.eq.s32.totalorder %v645_v17, %v672_v21  ;;  %vm103_vm1 = vcmp.eq.s32.totalorder %v651_v19, %v674_v22  ;;  %vm197_vm3 = vcmask 261120  }
  0x18   : > { %468 = vmatpush.msk.msra.mxu2 %vm94_vm4, %v571_v23  ;;  %483 = vmatpush.msk.msra.mxu3 %vm104_vm10, %v571_v23  ;;  %vm86_vm2 = vcmp.eq.s32.totalorder %v624_v10, %v672_v21  ;;  %vm85_vm4 = vcmp.eq.s32.totalorder %v624_v10, %v674_v22  ;;  %vm99_vm8 = vcmp.eq.s32.totalorder %v645_v17, %v674_v22 }
  0x19   : > { %443 = vmatpush.msk.msra.mxu0 %vm93_vm5, %v571_v23  ;;  %458 = vmatpush.msk.msra.mxu1 %vm103_vm1, %v571_v23  ;;  %vm101_vm5 = vcmp.eq.s32.totalorder %v648_v18, %v674_v22  ;;  %vm81_vm10 = vcmp.eq.s32.totalorder %v618_v8, %v674_v22  ;;  %vm77_vm14 = vcmp.eq.s32.totalorder %v612_v6, %v674_v22 }
  0x1a   : > { %469 = vmatpush.msk.msra.mxu2 %vm92_vm6, %v571_v23  ;;  %484 = vmatpush.msk.msra.mxu3 %vm102_vm12, %v571_v23  ;;  %vm84_vm6 = vcmp.eq.s32.totalorder %v621_v9, %v672_v21  ;;  %vm79_vm12 = vcmp.eq.s32.totalorder %v615_v7, %v674_v22  ;;  %vm74_vm1 = vcmp.eq.s32.totalorder %v606_v4, %v672_v21 }
  0x1b   : > { %444 = vmatpush.msk.msra.mxu0 %vm91_vm7, %v571_v23  ;;  %vm83_vm7 = vcmp.eq.s32.totalorder %v621_v9, %v674_v22  ;;  %459 = vmatpush.msk.msra.mxu1 %vm101_vm5, %v571_v23  ;;  %vm71_vm5 = vcmp.eq.s32.totalorder %v603_v3, %v674_v22 }
  0x1c   : > { %470 = vmatpush.msk.msra.mxu2 %vm90_vm9, %v571_v23  ;;  %485 = vmatpush.msk.msra.mxu3 %vm100_vm0, %v571_v23  ;;  %vm82_vm9 = vcmp.eq.s32.totalorder %v618_v8, %v672_v21  ;;  %vm75_vm0 = vcmp.eq.s32.totalorder %v609_v5, %v674_v22 }
  0x1d   : > { %445 = vmatpush.msk.msra.mxu0 %vm89_vm11, %v571_v23  ;;  %486 = vmatmul.msk.f32.vlgmr.msra.gmra.mxu3 %vm197_vm3, %v188_v24  ;;  %vm80_vm11 = vcmp.eq.s32.totalorder %v615_v7, %v672_v21 }
  0x1e   : > { %471 = vmatpush.msk.msra.mxu2 %vm88_vm13, %v571_v23  ;;  %460 = vmatpush.msk.msra.mxu1 %vm99_vm8, %v571_v23  ;;  %vm78_vm13 = vcmp.eq.s32.totalorder %v612_v6, %v672_v21  ;;  %vm68_vm8 = vcmp.eq.s32.totalorder %v597_v1, %v672_v21 }
  0x1f   : > { %446 = vmatpush.msk.msra.mxu0 %vm87_vm15, %v571_v23  ;;  %461 = vmatmul.msk.f32.vlgmr.msra.gmra.mxu1 %vm197_vm3, %v188_v24  ;;  %vm76_vm15 = vcmp.eq.s32.totalorder %v609_v5, %v672_v21 }
  0x20   : > { %472 = vmatpush.msk.msra.mxu2 %vm86_vm2, %v571_v23  ;;  %vm73_vm2 = vcmp.eq.s32.totalorder %v606_v4, %v674_v22 }
  0x21   : > { %447 = vmatpush.msk.msra.mxu0 %vm85_vm4, %v571_v23  ;;  %vm72_vm4 = vcmp.eq.s32.totalorder %v603_v3, %v672_v21 }
  0x22   : > { %473 = vmatpush.msk.msra.mxu2 %vm84_vm6, %v571_v23  ;;  %vm70_vm6 = vcmp.eq.s32.totalorder %v600_v2, %v672_v21 }
  0x23   : > { %448 = vmatpush.msk.msra.mxu0 %vm83_vm7, %v571_v23  ;;  %vm69_vm7 = vcmp.eq.s32.totalorder %v600_v2, %v674_v22 }
  0x24   : > { %474 = vmatpush.msk.msra.mxu2 %vm82_vm9, %v571_v23  ;;  %vm67_vm9 = vcmp.eq.s32.totalorder %v597_v1, %v674_v22 }
  0x25   : > { %449 = vmatpush.msk.msra.mxu0 %vm81_vm10, %v571_v23  ;;  %487 = vmatmul.msk.f32.gmra.mxu3 %vm197_vm3, %v190_v25 }
  0x26   : > { %475 = vmatpush.msk.msra.mxu2 %vm80_vm11, %v571_v23 }
  0x27   : > { %450 = vmatpush.msk.msra.mxu0 %vm79_vm12, %v571_v23  ;;  %462 = vmatmul.msk.f32.gmra.mxu1 %vm197_vm3, %v190_v25  ;;  %vm372_vm12 = vcmp.lt.s32.totalorder %v31_v0, 128 }
  0x28   : > { %476 = vmatpush.msk.msra.mxu2 %vm78_vm13, %v571_v23 }
  0x29   : > { %451 = vmatpush.msk.msra.mxu0 %vm77_vm14, %v571_v23 }
  0x2a   : > { %477 = vmatpush.msk.msra.mxu2 %vm76_vm15, %v571_v23 }
  0x2b   : > { %452 = vmatpush.msk.msra.mxu0 %vm75_vm0, %v571_v23 }
  0x2c   : > { %478 = vmatpush.msk.msra.mxu2 %vm74_vm1, %v571_v23 }
  0x2d   : > { %453 = vmatpush.msk.msra.mxu0 %vm73_vm2, %v571_v23  ;;  %488 = vmatmul.msk.f32.gmra.mxu3 %vm197_vm3, %v192_v26 }
  0x2e   : > { %479 = vmatpush.msk.msra.mxu2 %vm72_vm4, %v571_v23 }
  0x2f   : > { %454 = vmatpush.msk.msra.mxu0 %vm71_vm5, %v571_v23  ;;  %463 = vmatmul.msk.f32.gmra.mxu1 %vm197_vm3, %v192_v26 }
  0x30   : > { %480 = vmatpush.msk.msra.mxu2 %vm70_vm6, %v571_v23 }
  0x31   : > { %455 = vmatpush.msk.msra.mxu0 %vm69_vm7, %v571_v23 }
  0x32   : > { %481 = vmatpush.msk.msra.mxu2 %vm68_vm8, %v571_v23 }
  0x33   : > { %293 = vmatmul.f32.vlgmr.msra.gmra.mxu2 %v187_v27  ;;  %456 = vmatpush.msk.msra.mxu0 %vm67_vm9, %v571_v23 }
  0x34   : > { %229 = vmatmul.f32.vlgmr.msra.gmra.mxu0 %v187_v27 }
  0x35   : > { %489 = vmatmul.msk.f32.gmra.mxu3 %vm197_vm3, %v194_v28 }
  0x37   : > { %464 = vmatmul.msk.f32.gmra.mxu1 %vm197_vm3, %v194_v28 }
  0x3b   : > { %296 = vmatmul.f32.gmra.mxu2 %v189_v29 }
  0x3c   : > { %232 = vmatmul.f32.gmra.mxu0 %v189_v29 }
  0x3d   : > { %490 = vmatmul.msk.f32.gmra.mxu3 %vm197_vm3, %v196_v30 }
  0x3f   : > { %465 = vmatmul.msk.f32.gmra.mxu1 %vm197_vm3, %v196_v30 }
  0x43   : > { %299 = vmatmul.f32.gmra.mxu2 %v191_v31 }
  0x44   : > { %235 = vmatmul.f32.gmra.mxu0 %v191_v31 }
  0x4b   : > { %302 = vmatmul.f32.gmra.mxu2 %v193_v32 }
  0x4c   : > { %238 = vmatmul.f32.gmra.mxu0 %v193_v32 }
  0x53   : > { %305 = vmatmul.f32.gmra.mxu2 %v195_v33 }
  0x54   : > { %241 = vmatmul.f32.gmra.mxu0 %v195_v33 }
  0x9c   : > { %v262_v34 = vpop.f32.mrf.mxu1 }
  0xa0   : > { %v326_v35 = vpop.f32.mrf.mxu3 }
  0xa4   : > { %v265_v37 = vpop.f32.mrf.mxu1 }
  0xa8   : > { %v329_v39 = vpop.f32.mrf.mxu3 }
  0xac   : > { %v268_v42 = vpop.f32.mrf.mxu1 }
  0xb0   : > { %v332_v43 = vpop.f32.mrf.mxu3 }
  0xb1   : > { %v230_v36 = vpop.f32.mrf.mxu0 }
  0xb2   : > { %v263_v51 = vadd.f32 %v262_v34, %v230_v36 }
  0xb4   : > { %v271_v46 = vpop.f32.mrf.mxu1 }
  0xb6   : > { %v294_v38 = vpop.f32.mrf.mxu2 }
  0xb7   : > { %v327_v52 = vadd.f32 %v326_v35, %v294_v38 }
  0xb8   : > { %v335_v50 = vpop.f32.mrf.mxu3 }
  0xb9   : > { %v233_v40 = vpop.f32.mrf.mxu0  ;;  %v341_v58 = vmul.f32 %v327_v52, %v263_v51 }
  0xba   : > { %v266_v47 = vadd.f32 %v265_v37, %v233_v40 }
  0xbc   : > { %v274_v21 = vpop.f32.mrf.mxu1 }
  0xbe   : > { %v297_v41 = vpop.f32.mrf.mxu2 }
  0xbf   : > { %v330_v48 = vadd.f32 %v329_v39, %v297_v41 }
  0xc0   : > { %v338_v23 = vpop.f32.mrf.mxu3 }
  0xc1   : > { %v236_v44 = vpop.f32.mrf.mxu0  ;;  %v342_v55 = vmul.f32 %v330_v48, %v266_v47 }
  0xc2   : > { %v269_v53 = vadd.f32 %v268_v42, %v236_v44 }
  0xc3   : > { %v345_v61 = vadd.f32 %v342_v55, %v341_v58 }
  0xc6   : > { %v300_v45 = vpop.f32.mrf.mxu2 }
  0xc7   : > { %v333_v54 = vadd.f32 %v332_v43, %v300_v45 }
  0xc9   : > { %v239_v49 = vpop.f32.mrf.mxu0  ;;  %v343_v59 = vmul.f32 %v333_v54, %v269_v53 }
  0xca   : > { %v272_v56 = vadd.f32 %v271_v46, %v239_v49 }
  0xcb   : > { %v346_v22 = vadd.f32 %v345_v61, %v343_v59 }
  0xce   : > { %v303_v57 = vpop.f32.mrf.mxu2 }
  0xcf   : > { %v336_v60 = vadd.f32 %v335_v50, %v303_v57 }
  0xd1   : > { %v344_v62 = vmul.f32 %v336_v60, %v272_v56  ;;  %v242_v63 = vpop.f32.mrf.mxu0 }
  0xd2   : > { %v275_v25 = vadd.f32 %v274_v21, %v242_v63 }
  0xd3   : > { %v347_v24 = vadd.f32 %v346_v22, %v344_v62 }
  0xd5   : > { %v348_v28 = vrot.slane %v347_v24, 4 }
  0xd6   : > { %v306_v26 = vpop.f32.mrf.mxu2 }
  0xd7   : > { %v339_v27 = vadd.f32 %v338_v23, %v306_v26  ;;  %v349_v31 = vadd.f32 %v348_v28, %v347_v24 }
  0xd9   : > { %v354_v29 = vmul.f32 %v339_v27, %v275_v25  ;;  %v350_v32 = vrot.slane %v349_v31, 2 }
  0xdb   : > { %v355_v30 = vmax.f32 %v354_v29, 1e-16  ;;  %v351_v35 = vadd.f32 %v350_v32, %v349_v31 }
  0xdd   : > { %506 = vrsqrt.f32 %v355_v30  ;;  %v352_v38 = vrot.slane %v351_v35, 1  ;;  %vm362_vm10 = vweird.f32 %v355_v30 }
  0xdf   : > { %v353_v41 = vadd.f32 %v352_v38, %v351_v35 }
  0xe3   : > { %v507_v33 = vpop.eup %506 }
  0xe4   : > { %v357_v34 = vmul.f32 %v507_v33, %v355_v30  ;;  %vm363_vm3 = vweird.f32 %v507_v33 }
  0xe5   : > { %vm364_vm11 = vmor %vm362_vm10, %vm363_vm3 }
  0xe6   : > { %v358_v36 = vmul.f32 %v507_v33, %v357_v34 }
  0xe8   : > { %v359_v37 = vmul.f32 0.5, %v358_v36 }
  0xea   : > { %v360_v39 = vsub.f32 1.5, %v359_v37 }
  0xec   : > { %v361_v40 = vmul.f32 %v507_v33, %v360_v39 }
  0xee   : > { %v365_v42 = vsel %vm364_vm11, %v507_v33, %v361_v40 }
  0xef   : > { %v366_v43 = vmul.f32 %v365_v42, %v353_v41 }
  0xf1   : > { %v367_v44 = vmul.f32 2.5, %v366_v43  ;;  %56 = sbr.rel (!%p54_p0) target bundleno = 15 (0xf), region = 46 }
  0xf3   : > { %v368_v45 = vadd.f32 2.75, %v367_v44 }
  0xf5   : > { %374 = vst.msk [vmem:[%s369_s27] sm:$0x1] %vm372_vm12, %v368_v45 }
  0xf6   :  { %385 = dma.vmem_to_hbm [thread:$0]  %s381_s5, 64, %s383_s30, [#allocation4]  }
  0xf7   :  { %562 = dma.done.wait [#allocation4], 64  }
  0xf8   :  { %563 = vsyncadd [#allocation4], 4294967232 }
  0xf9   :  { %390 = vsyncpa [#allocation3], 1 }
  0xfa   :  { %391 = vsyncpa [#allocation4], 1 }

</bundles_post_ra>
